<compile_context>
chip_gen: v6e
topology: v6e:2x2x1
jax: 0.10.0
libtpu: 0.0.40
codegen_flags: <defaults>
</compile_context>

<pallas_src>
import functools

import jax
import jax.numpy as jnp
from jax.experimental import pallas as pl
from jax.experimental.pallas import tpu as pltpu


def _window_sum_tree(seg, K, C, delta, cw):
    """Sum of K consecutive time steps via a doubling tree of shifted adds.

    seg  : (TB, W) f32 value; seg[:, delta + j + k*C] is tap k of output j.
    Returns (TB, cw) f32 with out[:, j] = sum_k seg[:, delta + j + k*C].
    Uses only static value slices (lane rotates on registers) and adds:
    ~2*log2(K) slices and log2(K)+popcount(K) adds instead of K of each.
    """
    cur = seg          # invariant: cur[:, i] = sum_{q < p} seg[:, i + q*C]
    acc = None
    covered = 0        # taps already folded into acc
    p = 1
    rem = K
    while True:
        if rem & 1:
            off = delta + covered * C
            term = cur[:, off: off + cw]
            acc = term if acc is None else acc + term
            covered += p
        rem >>= 1
        if rem == 0:
            break
        w = cur.shape[1]
        cur = cur[:, : w - p * C] + cur[:, p * C:]   # power doubling
        p *= 2
    return acc


def _moving_avg_kernel(x_ref, o_ref, *rest, L, C, K, pad, base, chunk,
                       with_residual):
    """Process one batch block.

    x_ref : (TB, L*C)        input rows, time-major, channels flattened to lanes
    o_ref : (TB, L_full*C)   stride-1 moving-average output
    r_ref : (TB, L*C)        optional fused residual x - mean (series_decomp)
    xp_ref: (TB, Wp)         VMEM scratch holding the replication-padded rows,
                             with the un-padded data starting at `base` (128-aligned)
    """
    if with_residual:
        r_ref, xp_ref = rest
    else:
        (xp_ref,) = rest
        r_ref = None

    LC = L * C
    OC = o_ref.shape[1]
    off0 = base - pad * C          # where the padded row starts inside xp_ref

    # ---- replication-padded row in VMEM; bulk copy at a 128-aligned base ----
    COPY = 2048                    # bounded live value per copy step (aligned)
    j = 0
    while j < LC:
        w = min(COPY, LC - j)
        xp_ref[:, base + j: base + j + w] = x_ref[:, j: j + w]
        j += COPY
    if pad > 0:
        first = x_ref[:, :C]       # first time step (TB, C)
        last = x_ref[:, LC - C:]   # last time step  (TB, C)
        left0 = base - pad * C
        right0 = base + LC
        # Tiny static region (pad*C lanes total); negligible next to the
        # LC-wide streaming work, so narrow stores are fine here.
        for p in range(pad):
            xp_ref[:, left0 + p * C: left0 + (p + 1) * C] = first
            xp_ref[:, right0 + p * C: right0 + (p + 1) * C] = last

    inv_k = 1.0 / K

    # ---- per chunk: ONE aligned segment load + doubling-tree window sum -----
    j0 = 0
    while j0 < OC:                 # small static Python loop over lane chunks
        cw = min(chunk, OC - j0)
        start = off0 + j0                    # first padded lane this chunk needs
        astart = (start // 128) * 128        # align the segment load down
        delta = start - astart
        W = delta + cw + (K - 1) * C
        seg = xp_ref[:, astart: astart + W].astype(jnp.float32)

        mean = _window_sum_tree(seg, K, C, delta, cw) * inv_k
        o_ref[:, j0: j0 + cw] = mean.astype(o_ref.dtype)
        if r_ref is not None:
            # series_decomp residual, fused while x is already in VMEM
            res = x_ref[:, j0: j0 + cw].astype(jnp.float32) - mean
            r_ref[:, j0: j0 + cw] = res.astype(r_ref.dtype)
        j0 += chunk


def _chunk_for(tb, K, C):
    # ~3 live f32 (tb, W) values during the tree (cur, shifted cur, acc); keep
    # them comfortably inside the 64-vreg file: 3 * tb * W * 4B <~ 40 * 4KiB.
    w_budget = max(256, (10 * 1024) // max(tb, 1))
    chunk = ((w_budget - (K - 1) * C) // 128) * 128
    return max(128, min(chunk, 2048))


def _pick_batch_block(B, K, C):
    """Block height: multiple of 8 dividing B, preferring >=2 (ideally >=4)
    grid steps (v7x megacore + pipelining) and a lane chunk of >= 512."""
    cands = [tb for tb in (32, 16, 8) if B % tb == 0]
    if not cands:
        return B                   # small / odd batch: one block = whole batch
    for min_steps in (4, 2, 1):
        ok = [tb for tb in cands
              if B // tb >= min_steps and _chunk_for(tb, K, C) >= 512]
        if ok:
            return ok[0]
    return cands[-1]


def _moving_avg_impl(x, kernel_size, stride, with_residual):
    B, L, C = x.shape
    K = int(kernel_size)
    stride = int(stride)
    pad = (K - 1) // 2
    L_pad = L + 2 * pad
    L_full = L_pad - K + 1                   # stride-1 output length
    L_out = (L_pad - K) // stride + 1

    if with_residual and (stride != 1 or L_full != L):
        raise ValueError("fused residual needs stride == 1 and odd kernel_size")

    LC = L * C
    OC = L_full * C
    base = -(-(pad * C) // 128) * 128        # 128-aligned base for the bulk copy
    Wp = -(-(base + LC + pad * C) // 128) * 128

    TB = _pick_batch_block(B, K, C)
    chunk = _chunk_for(TB, K, C)
    grid_b = pl.cdiv(B, TB)                  # TB divides B (or equals B)

    x2 = x.reshape(B, LC)                    # free reshape -> lane-dense layout

    out_shape = [jax.ShapeDtypeStruct((B, OC), x.dtype)]
    out_specs = [pl.BlockSpec((TB, OC), lambda b: (b, 0))]
    if with_residual:
        out_shape.append(jax.ShapeDtypeStruct((B, LC), x.dtype))
        out_specs.append(pl.BlockSpec((TB, LC), lambda b: (b, 0)))

    kern = functools.partial(_moving_avg_kernel, L=L, C=C, K=K, pad=pad,
                             base=base, chunk=chunk,
                             with_residual=with_residual)

    outs = pl.pallas_call(
        kern,
        out_shape=tuple(out_shape) if with_residual else out_shape[0],
        grid_spec=pltpu.PrefetchScalarGridSpec(
            num_scalar_prefetch=0,
            grid=(grid_b,),
            in_specs=[pl.BlockSpec((TB, LC), lambda b: (b, 0))],
            out_specs=out_specs if with_residual else out_specs[0],
            scratch_shapes=[pltpu.VMEM((TB, Wp), x.dtype)],
        ),
        compiler_params=pltpu.CompilerParams(dimension_semantics=("parallel",)),
    )(x2)

    if with_residual:
        y2, r2 = outs
    else:
        y2, r2 = outs, None

    y = y2.reshape(B, L_full, C)
    if stride != 1:
        # TODO(synk): subsample inside the kernel for stride > 1 (DLinear uses 1).
        y = y[:, ::stride, :][:, :L_out, :]
    if with_residual:
        return y, r2.reshape(B, L, C)
    return y


def moving_avg(x, kernel_size, stride):
    """Pallas TPU equivalent of the PyTorch `moving_avg.forward`."""
    return _moving_avg_impl(x, kernel_size, stride, with_residual=False)


def series_decomp(x, kernel_size):
    """Fused DLinear series_decomp: returns (res, moving_mean) in one kernel."""
    mean, res = _moving_avg_impl(x, kernel_size, 1, with_residual=True)
    return res, mean


def _reference_moving_avg(x, kernel_size, stride):
    # Pure-JAX reference mirroring the PyTorch semantics.
    pad = (kernel_size - 1) // 2
    front = jnp.repeat(x[:, 0:1, :], pad, axis=1)
    end = jnp.repeat(x[:, -1:, :], pad, axis=1)
    xp = jnp.concatenate([front, x, end], axis=1)   # (B, L_pad, C)
    L_pad = xp.shape[1]
    L_out = (L_pad - kernel_size) // stride + 1
    outs = [jnp.mean(xp[:, t * stride:t * stride + kernel_size, :], axis=1)
            for t in range(L_out)]
    return jnp.stack(outs, axis=1)


if __name__ == "__main__":
    key = jax.random.PRNGKey(0)
    configs = [
        # (B, L, C, kernel_size, stride)
        (2, 16, 8, 5, 1),      # small demo config (single block, single chunk)
        (8, 32, 7, 25, 1),     # typical DLinear config (C=7, K=25)
        (16, 24, 7, 25, 1),    # multi-block grid path (TB=8, 2 grid steps)
        (2, 16, 8, 4, 2),      # even kernel + stride > 1 path
    ]
    for cfg in configs:
        B, L, C, K, S = cfg
        key, sub = jax.random.split(key)
        x = jax.random.normal(sub, (B, L, C), dtype=jnp.float32)

        out = jax.block_until_ready(moving_avg(x, K, S))
        ref = _reference_moving_avg(x, K, S)
        assert out.shape == ref.shape, (cfg, out.shape, ref.shape)
        err = float(jnp.max(jnp.abs(out - ref)))
        assert err < 1e-5, (cfg, err)

    # fused series_decomp path (res = x - moving_mean from the same kernel)
    key, sub = jax.random.split(key)
    x = jax.random.normal(sub, (8, 32, 7), dtype=jnp.float32)
    res, mean = series_decomp(x, 25)
    jax.block_until_ready(res)
    ref_mean = _reference_moving_avg(x, 25, 1)
    err = max(float(jnp.max(jnp.abs(mean - ref_mean))),
              float(jnp.max(jnp.abs(res - (x - ref_mean)))))
    assert err < 1e-5, err

    print("KERNEL_OK")
</pallas_src>

<mosaic_0001>
module attributes {stable_mosaic.version = 11 : i64} {
  func.func @_moving_avg_kernel(%arg0: i32, %arg1: memref<2x128xf32, #tpu.memory_space<vmem>>, %arg2: memref<2x128xf32, #tpu.memory_space<vmem>>, %arg3: memref<2x384xf32, #tpu.memory_space<vmem>>) attributes {dimension_semantics = [#tpu.dimension_semantics<parallel>], iteration_bounds = array<i64: 1>, scalar_prefetch = 0 : i64, scratch_operands = 1 : i64, tpu.core_type = #tpu.core_type<tc>, window_params = [{transform_indices = @transform_0, window_bounds = array<i64: 2, 128>}, {transform_indices = @transform_1, window_bounds = array<i64: 2, 128>}]} {
    %c0 = arith.constant 0 : index
    %c0_0 = arith.constant 0 : index
    %0 = vector.load %arg1[%c0, %c0_0] : memref<2x128xf32, #tpu.memory_space<vmem>>, vector<2x128xf32>
    %c0_1 = arith.constant 0 : index
    %c128 = arith.constant 128 : index
    %1 = vector.load %arg3[%c0_1, %c128] : memref<2x384xf32, #tpu.memory_space<vmem>>, vector<2x128xf32>
    tpu.vector_store %arg3[%c0_1, %c128], %0 {strides = array<i32>} : memref<2x384xf32, #tpu.memory_space<vmem>>, vector<2x128xf32>,
    %c0_2 = arith.constant 0 : index
    %c0_3 = arith.constant 0 : index
    %2 = vector.load %arg1[%c0_2, %c0_3] : memref<2x128xf32, #tpu.memory_space<vmem>>, vector<2x8xf32>
    %c0_4 = arith.constant 0 : index
    %c120 = arith.constant 120 : index
    %3 = vector.load %arg1[%c0_4, %c120] : memref<2x128xf32, #tpu.memory_space<vmem>>, vector<2x8xf32>
    %c0_5 = arith.constant 0 : index
    %c112 = arith.constant 112 : index
    %4 = vector.load %arg3[%c0_5, %c112] : memref<2x384xf32, #tpu.memory_space<vmem>>, vector<2x8xf32>
    tpu.vector_store %arg3[%c0_5, %c112], %2 {strides = array<i32>} : memref<2x384xf32, #tpu.memory_space<vmem>>, vector<2x8xf32>,
    %c0_6 = arith.constant 0 : index
    %c256 = arith.constant 256 : index
    %5 = vector.load %arg3[%c0_6, %c256] : memref<2x384xf32, #tpu.memory_space<vmem>>, vector<2x8xf32>
    tpu.vector_store %arg3[%c0_6, %c256], %3 {strides = array<i32>} : memref<2x384xf32, #tpu.memory_space<vmem>>, vector<2x8xf32>,
    %c0_7 = arith.constant 0 : index
    %c120_8 = arith.constant 120 : index
    %6 = vector.load %arg3[%c0_7, %c120_8] : memref<2x384xf32, #tpu.memory_space<vmem>>, vector<2x8xf32>
    tpu.vector_store %arg3[%c0_7, %c120_8], %2 {strides = array<i32>} : memref<2x384xf32, #tpu.memory_space<vmem>>, vector<2x8xf32>,
    %c0_9 = arith.constant 0 : index
    %c264 = arith.constant 264 : index
    %7 = vector.load %arg3[%c0_9, %c264] : memref<2x384xf32, #tpu.memory_space<vmem>>, vector<2x8xf32>
    tpu.vector_store %arg3[%c0_9, %c264], %3 {strides = array<i32>} : memref<2x384xf32, #tpu.memory_space<vmem>>, vector<2x8xf32>,
    %c0_10 = arith.constant 0 : index
    %c0_11 = arith.constant 0 : index
    %8 = vector.load %arg3[%c0_10, %c0_11] : memref<2x384xf32, #tpu.memory_space<vmem>>, vector<2x272xf32>
    %9 = vector.extract_strided_slice %8 {offsets = [0, 112], sizes = [2, 128], strides = [1, 1]} : vector<2x272xf32> to vector<2x128xf32>
    %10 = vector.extract_strided_slice %8 {offsets = [0, 0], sizes = [2, 264], strides = [1, 1]} : vector<2x272xf32> to vector<2x264xf32>
    %11 = vector.extract_strided_slice %8 {offsets = [0, 8], sizes = [2, 264], strides = [1, 1]} : vector<2x272xf32> to vector<2x264xf32>
    %12 = arith.addf %10, %11 : vector<2x264xf32>
    %13 = vector.extract_strided_slice %12 {offsets = [0, 0], sizes = [2, 248], strides = [1, 1]} : vector<2x264xf32> to vector<2x248xf32>
    %14 = vector.extract_strided_slice %12 {offsets = [0, 16], sizes = [2, 248], strides = [1, 1]} : vector<2x264xf32> to vector<2x248xf32>
    %15 = arith.addf %13, %14 : vector<2x248xf32>
    %16 = vector.extract_strided_slice %15 {offsets = [0, 120], sizes = [2, 128], strides = [1, 1]} : vector<2x248xf32> to vector<2x128xf32>
    %17 = arith.addf %9, %16 : vector<2x128xf32>
    %cst = arith.constant 2.000000e-01 : f32
    %18 = vector.broadcast %cst : f32 to vector<2x128xf32>
    %19 = arith.mulf %17, %18 : vector<2x128xf32>
    %c0_12 = arith.constant 0 : index
    %c0_13 = arith.constant 0 : index
    %20 = vector.load %arg2[%c0_12, %c0_13] : memref<2x128xf32, #tpu.memory_space<vmem>>, vector<2x128xf32>
    tpu.vector_store %arg2[%c0_12, %c0_13], %19 {strides = array<i32>} : memref<2x128xf32, #tpu.memory_space<vmem>>, vector<2x128xf32>,
    return
  }
  func.func @transform_0(%arg0: i32) -> (i32, i32) {
    %c0_i32 = arith.constant 0 : i32
    %c0_i32_0 = arith.constant 0 : i32
    return %arg0, %c0_i32 : i32, i32
  }
  func.func @transform_1(%arg0: i32) -> (i32, i32) {
    %c0_i32 = arith.constant 0 : i32
    %c0_i32_0 = arith.constant 0 : i32
    return %arg0, %c0_i32 : i32, i32
  }
}

</mosaic_0001>

<bundles_post_ra>
// kernel: tpu_custom_call.1
= control target key start
LH: loop header
LB: loop body
LE: loop exit
PB: predicated region body
PF: predicated region fallthrough
CT: control target
= control target key end

     0   :  { %6 = vsyncpa [#allocation4], 0  ;;  %s192_s0 = inlined_call_operand.hbm [shape: f32[2,128], index: 0, kind: input, shape index: {}]   ;;  %s193_s1 = inlined_call_operand.hbm [shape: f32[2,128], index: 1, kind: output, shape index: {}]  }
   0x1   :  { %7 = vsyncpa [#allocation5], 0  ;;  %s161_s6 = smov [#allocation3]  }
   0x2   :  { %s14_s7 = sshll.u32 %s161_s6, 4  ;;  %s15_s7 = int_to_ptr.vmem [resolvable:$true] %s14_s7 }
   0x3   :  { %s125_s8 = scalar_lea.vmem %s15_s7, 32  ;;  %p130_p1 = scmp.lt.s32.totalorder %s15_s7, %s15_s7 }
   0x4   :  { %p126_p0 = scmp.ne.s32.totalorder %s15_s7, %s125_s8  ;;  %p131_p2 = scmp.lt.s32.totalorder %s125_s8, %s125_s8 }
   0x6   :  { %p132_p3 = por %p131_p2, %p130_p1 }
   0x8   :  { %p133_p4 = pnand %p132_p3, %p126_p0 }
   0xa   :  { %136 = shalt.err (!%p133_p4)
}
   0xb   :  { %17 = dma.hbm_to_vmem [thread:$0]  %s192_s0, 32, %s15_s7, [#allocation4]  }
   0xc   :  { %157 = dma.done.wait [#allocation4], 32  }
   0xd   :  { %158 = vsyncadd [#allocation4], 4294967264  ;;  %v21_v0 = vld [vmem:[#allocation3] sm:$0x3]  ;;  %s162_s11 = smov 112   ;;  %s163_s12 = smov 120   ;;  %v81_v17 = vlaneseq }
   0xe   :  { %v109_v1 = vld.sshfl [vmem:[#allocation3] sm:$0x3 pattern:$0x76325410]  ;;  %22 = vst [vmem:[#allocation2 + $0x2] sm:$0x3] %v21_v0 }
   0xf   :  { %32 = vrot.lane.b32.xlu0 %v109_v1, %s162_s11  ;;  %42 = vrot.lane.b32.xlu1 %v109_v1, %s163_s12  ;;  %s164_s13 = smov 8   ;;  %s165_s14 = smov 16   ;;  %vm35_vm0 = vcmask 976768   ;;  %vm45_vm1 = vcmask 1042368   ;;  %vm40_vm2 = vcmask 58368   ;;  %vm50_vm3 = vcmask 123968  }
  0x10   :  { %vm57_vm4 = vcmask 982016   ;;  %vm65_vm5 = vcmask 916480   ;;  %v166_v15 = vmov 1983009808   ;;  %v82_v20 = vshrl.u32 %v81_v17, 7  ;;  %s167_s0 = smov [#allocation6]  }
  0x11   :  { %v79_v16 = vunpack.c.l.s4 %v166_v15  ;;  %s100_s15 = sshll.u32 %s167_s0, 4  ;;  %vm90_vm6 = vcmask 130048   ;;  %s101_s15 = int_to_ptr.vmem [resolvable:$true] %s100_s15 }
  0x12   :  { %s137_s16 = scalar_lea.vmem %s101_s15, 32  ;;  %p142_p6 = scmp.lt.s32.totalorder %s101_s15, %s101_s15 }
  0x13   :  { %37 = vrot.lane.b32.xlu0 %v109_v1, %s164_s13  ;;  %47 = vrot.lane.b32.xlu1 %v109_v1, %s165_s14  ;;  %v80_v19 = vunpack.c.0.s8 %v79_v16  ;;  %p138_p5 = scmp.ne.s32.totalorder %s101_s15, %s137_s16  ;;  %p143_p7 = scmp.lt.s32.totalorder %s137_s16, %s137_s16 }
  0x15   :  { %v83_v24 = vsub.s32 %v80_v19, %v82_v20  ;;  %p144_p8 = por %p143_p7, %p142_p6 }
  0x17   :  { %p145_p9 = pnand %p144_p8, %p138_p5 }
  0x81   :  { %v33_v2 = vpop.permute.xlu0 %32  ;;  %v43_v3 = vpop.permute.xlu1 %42 }
  0x82   :  { %36 = vst.msk [vmem:[#allocation2] sm:$0x3] %vm35_vm0, %v33_v2 }
  0x83   :  { %46 = vst.msk [vmem:[#allocation2] sm:$0x3] %vm45_vm1, %v43_v3 }
  0x85   :  { %v38_v4 = vpop.permute.xlu0 %37  ;;  %v48_v5 = vpop.permute.xlu1 %47 }
  0x86   :  { %41 = vst.msk [vmem:[#allocation2 + $0x4] sm:$0x3] %vm40_vm2, %v38_v4 }
  0x87   :  { %51 = vst.msk [vmem:[#allocation2 + $0x4] sm:$0x3] %vm50_vm3, %v48_v5 }
  0x8e   :  { %v52_v6 = vld [vmem:[#allocation2] sm:$0x3f] }
  0x8f   :  { %54 = vrot.lane.b32.xlu0 %v52_v6, %s163_s12 }
 0x101   :  { %v55_v7 = vpop.permute.xlu0 %54 }
 0x102   :  { %v56_v8 = vrot.slane %v55_v7, 2 }
 0x104   :  { %v58_v9 = vsel %vm57_vm4, %v55_v7, %v56_v8 }
 0x105   :  { %v60_v10 = vadd.f32 %v58_v9, %v52_v6 }
 0x107   :  { %62 = vrot.lane.b32.xlu1 %v60_v10, %s162_s11 }
 0x179   :  { %v63_v11 = vpop.permute.xlu1 %62 }
 0x17a   :  { %v64_v12 = vrot.slane %v63_v11, 2 }
 0x17c   :  { %v66_v13 = vsel %vm65_vm5, %v63_v11, %v64_v12 }
 0x17d   :  { %v68_v14 = vadd.f32 %v66_v13, %v60_v10 }
 0x17f   :  { %70 = vrot.lane.b32.xlu0 %v68_v14, %s163_s12 }
 0x1f1   :  { %v71_v18 = vpop.permute.xlu0 %70 }
 0x1f2   :  { %v72_v21 = vrot.slane %v71_v18, 2 }
 0x1f4   :  { %v73_v22 = vsel %vm57_vm4, %v71_v18, %v72_v21 }
 0x1f5   :  { %v75_v23 = vadd.f32 %v73_v22, %v52_v6 }
 0x1f7   :  { %v76_v25 = vmul.f32 0.2, %v75_v23 }
 0x1f9   :  { %v84_v26 = vrot.slane %v76_v25, %v83_v24 }
 0x1fb   :  { %86 = vrot.lane.b32.xlu1 %v84_v26, %s165_s14  ;;  %v85_v27 = vcombine.high %v84_v26, %v84_v26 }
 0x1fd   :  { %88 = vrot.lane.b32.xlu0 %v85_v27, %s165_s14 }
 0x26d   :  { %v87_v28 = vpop.permute.xlu1 %86 }
 0x26f   :  { %v89_v29 = vpop.permute.xlu0 %88 }
 0x270   :  { %v91_v30 = vsel %vm90_vm6, %v87_v28, %v89_v29 }
 0x271   :  { %93 = vst [vmem:[#allocation6] sm:$0x3] %v91_v30 }
 0x272   :  { %148 = shalt.err (!%p145_p9)
}
 0x273   :  { %103 = dma.vmem_to_hbm [thread:$0]  %s101_s15, 32, %s193_s1, [#allocation5]  }
 0x274   :  { %159 = dma.done.wait [#allocation5], 32  }
 0x275   :  { %160 = vsyncadd [#allocation5], 4294967264 }
 0x276   :  { %107 = vsyncpa [#allocation4], 1 }
 0x277   :  { %108 = vsyncpa [#allocation5], 1 }

</bundles_post_ra>
